<compile_context>
chip_gen: v7x
topology: tpu7x:2x2x1
jax: 0.10.0
libtpu: 0.0.40
codegen_flags: <defaults>
</compile_context>

<pallas_src>
import jax
import jax.numpy as jnp
from jax.experimental import pallas as pl
from jax.experimental.pallas import tpu as pltpu


# ----------------------------- kernel bodies ------------------------------ #

def _pw_body(x_ref, w_ref, shift_ref, o_ref, alpha_ref=None):
    # Standard (HW >= 128) path: channels on sublanes, H*W on lanes.
    #   x_ref:     (C_in, t_hw)   original dtype; cast to bf16 here (no extra
    #                             wrapper-side HBM pass)
    #   w_ref:     (C_out, C_in)  bf16, BN scale already folded in
    #   shift_ref: (C_out, 1)     f32
    #   alpha_ref: (C_out, 1)     f32 PReLU slope (Conv_block only)
    #   o_ref:     (C_out, t_hw)  bf16, lane-dense stores
    x = x_ref[...].astype(jnp.bfloat16)
    acc = jnp.dot(w_ref[...], x, preferred_element_type=jnp.float32)
    y = acc + shift_ref[...]                      # f32 epilogue
    if alpha_ref is not None:                     # fused PReLU (VALU slack)
        y = jnp.where(y > 0, y, alpha_ref[...] * y)
    o_ref[...] = y.astype(o_ref.dtype)


def _pw_kernel(x_ref, w_ref, shift_ref, o_ref):
    _pw_body(x_ref, w_ref, shift_ref, o_ref)


def _pw_prelu_kernel(x_ref, w_ref, shift_ref, alpha_ref, o_ref):
    _pw_body(x_ref, w_ref, shift_ref, o_ref, alpha_ref)


def _pw_body_cl(x_ref, w_ref, shift_ref, o_ref, alpha_ref=None):
    # Channel-last (HW < 128) path: C_out on lanes so stores stay lane-dense
    # (avoids masked partial stores for the deep 7x7 / 14x14 stages).
    #   x_ref: (C_in, HW);  o_ref: (HW, C_out);  shift/alpha: (1, C_out)
    x = x_ref[...].astype(jnp.bfloat16)
    acc = jax.lax.dot_general(                    # out[hw, co] = sum_ci x*w
        x, w_ref[...], dimension_numbers=(((0,), (1,)), ((), ())),
        preferred_element_type=jnp.float32)       # (HW, C_out)
    y = acc + shift_ref[...]
    if alpha_ref is not None:
        y = jnp.where(y > 0, y, alpha_ref[...] * y)
    o_ref[...] = y.astype(o_ref.dtype)


def _pw_cl_kernel(x_ref, w_ref, shift_ref, o_ref):
    _pw_body_cl(x_ref, w_ref, shift_ref, o_ref)


def _pw_cl_prelu_kernel(x_ref, w_ref, shift_ref, alpha_ref, o_ref):
    _pw_body_cl(x_ref, w_ref, shift_ref, o_ref, alpha_ref)


# ------------------------------ tile sizing ------------------------------- #

def _vmem_params():
    """Generation-aware VMEM tile budget and scoped-VMEM limit."""
    try:
        info = pltpu.get_tpu_info()
        phys = int(getattr(info, "vmem_capacity_bytes", 64 << 20))
    except Exception:
        phys = 64 << 20                                   # conservative (v7x)
    limit = min(3 * phys // 4, 96 << 20)                  # 48 MiB v7x, 96 MiB v5e/v6e
    budget = min(phys // 3, 40 << 20)                     # ~21 MiB v7x, 40 MiB v5e/v6e
    return budget, limit


def _pick_hw_tile(hw, c_in, c_out, x_bytes, o_bytes, budget):
    """Largest 128-multiple lane tile fitting VMEM, capped so the HW grid keeps
    >= ~4 steps for software pipelining (and TC sharding on v7x)."""
    if hw <= 128:
        return int(hw)
    # Per-lane-column VMEM cost: double-buffered x + out, f32 epilogue acc,
    # in-kernel bf16 cast intermediate.
    per_col = 2 * c_in * x_bytes + 2 * c_out * o_bytes + 4 * c_out + 2 * c_in
    fixed = 2 * c_out * c_in * 2 + (4 << 10)              # weight dbl-buf + misc
    t_vmem = max(128, (max(budget - fixed, 0) // per_col) // 128 * 128)
    # Aim for >= 4 HW steps, 512-wide floor (measured ~85% of HBM roofline).
    t_pipe = max(512, pl.cdiv(pl.cdiv(hw, 4), 128) * 128)
    t = min(t_vmem, t_pipe, pl.cdiv(hw, 128) * 128)
    return int(max(128, t))


# -------------------------------- wrapper --------------------------------- #

def _fused_pointwise(x_nchw, weight, gamma, beta, running_mean, running_var,
                     eps=1e-5, prelu_alpha=None, t_hw=None,
                     out_dtype=jnp.bfloat16):
    """Fused 1x1 Conv2d(bias=False) + BatchNorm2d(eval) [+ PReLU], NCHW input."""
    N, C_in, H, W = x_nchw.shape
    C_out = weight.shape[0]
    assert weight.shape[1] == C_in and tuple(weight.shape[2:]) == (1, 1), (
        "only the 1x1 / stride-1 / groups-1 pointwise path is lowered")
    HW = H * W

    # Fold eval-mode BN into the weight (scale) and a per-channel shift.
    scale = gamma * jax.lax.rsqrt(running_var + eps)
    w2 = (weight.reshape(C_out, C_in) * scale[:, None]).astype(jnp.bfloat16)
    shift = (beta - running_mean * scale).astype(jnp.float32)

    # NCHW kept: free reshape, NO wrapper-side cast (activation read from HBM
    # exactly once; bf16 cast happens inside the kernel).
    x3 = x_nchw.reshape(N, C_in, HW)
    x_bytes = jnp.dtype(x3.dtype).itemsize
    o_bytes = jnp.dtype(out_dtype).itemsize
    budget, vmem_limit = _vmem_params()

    flops = int(2 * N * HW * C_in * C_out)
    bytes_accessed = int(N * C_in * HW * x_bytes + C_out * C_in * 2
                         + C_out * 4 * (1 if prelu_alpha is None else 2)
                         + N * C_out * HW * o_bytes)

    if HW < 128:
        # Deep small-spatial stages: channel-last output (lane-dense stores).
        in_specs = [
            pl.BlockSpec((None, C_in, HW), lambda n: (n, 0, 0)),    # x (whole)
            pl.BlockSpec((C_out, C_in), lambda n: (0, 0)),          # resident W
            pl.BlockSpec((1, C_out), lambda n: (0, 0)),             # shift
        ]
        inputs = [x3, w2, shift.reshape(1, C_out)]
        if prelu_alpha is not None:
            in_specs.append(pl.BlockSpec((1, C_out), lambda n: (0, 0)))
            inputs.append(prelu_alpha.reshape(1, C_out).astype(jnp.float32))
            kernel = _pw_cl_prelu_kernel
        else:
            kernel = _pw_cl_kernel
        out = pl.pallas_call(
            kernel,
            out_shape=jax.ShapeDtypeStruct((N, HW, C_out), out_dtype),
            grid_spec=pltpu.PrefetchScalarGridSpec(
                num_scalar_prefetch=0,
                grid=(N,),
                in_specs=in_specs,
                out_specs=pl.BlockSpec((None, HW, C_out), lambda n: (n, 0, 0)),
            ),
            compiler_params=pltpu.CompilerParams(
                dimension_semantics=("parallel",),
                vmem_limit_bytes=vmem_limit),
            cost_estimate=pl.CostEstimate(
                flops=flops, transcendentals=0, bytes_accessed=bytes_accessed),
        )(*inputs)
        # Small layout fixup back to NCHW (cheap at deep-stage sizes).
        return out.transpose(0, 2, 1).reshape(N, C_out, H, W)

    # Standard path: H*W on the lane axis.
    if t_hw is None:
        t_hw = _pick_hw_tile(HW, C_in, C_out, x_bytes, o_bytes, budget)
    if N == 1 and HW > 128:
        # v7x: keep >= 2 parallel grid steps so both TensorCores get work.
        t_hw = min(t_hw, max(128, pl.cdiv(pl.cdiv(HW, 2), 128) * 128))

    in_specs = [
        pl.BlockSpec((None, C_in, t_hw), lambda n, j: (n, 0, j)),   # x tile
        pl.BlockSpec((C_out, C_in), lambda n, j: (0, 0)),           # resident W
        pl.BlockSpec((C_out, 1), lambda n, j: (0, 0)),              # shift
    ]
    inputs = [x3, w2, shift.reshape(C_out, 1)]
    if prelu_alpha is not None:
        in_specs.append(pl.BlockSpec((C_out, 1), lambda n, j: (0, 0)))
        inputs.append(prelu_alpha.reshape(C_out, 1).astype(jnp.float32))
        kernel = _pw_prelu_kernel
    else:
        kernel = _pw_kernel

    out3 = pl.pallas_call(
        kernel,
        out_shape=jax.ShapeDtypeStruct((N, C_out, HW), out_dtype),
        grid_spec=pltpu.PrefetchScalarGridSpec(
            num_scalar_prefetch=0,
            grid=(N, pl.cdiv(HW, t_hw)),
            in_specs=in_specs,
            out_specs=pl.BlockSpec((None, C_out, t_hw), lambda n, j: (n, 0, j)),
        ),
        compiler_params=pltpu.CompilerParams(
            dimension_semantics=("parallel", "parallel"),
            vmem_limit_bytes=vmem_limit),
        cost_estimate=pl.CostEstimate(
            flops=flops, transcendentals=0, bytes_accessed=bytes_accessed),
    )(*inputs)
    return out3.reshape(N, C_out, H, W)


def linear_block(x, weight, gamma, beta, running_mean, running_var, eps=1e-5,
                 out_dtype=jnp.bfloat16):
    """MobileFaceNet Linear_block: 1x1 Conv2d (bias=False) -> BatchNorm2d."""
    return _fused_pointwise(x, weight, gamma, beta, running_mean, running_var,
                            eps=eps, out_dtype=out_dtype)


def conv_block(x, weight, gamma, beta, running_mean, running_var, prelu_alpha,
               eps=1e-5, out_dtype=jnp.bfloat16):
    """MobileFaceNet Conv_block: 1x1 Conv2d -> BatchNorm2d -> PReLU (fused)."""
    return _fused_pointwise(x, weight, gamma, beta, running_mean, running_var,
                            eps=eps, prelu_alpha=prelu_alpha,
                            out_dtype=out_dtype)


# ------------------------------- reference -------------------------------- #

def _reference(x_nchw, weight, gamma, beta, running_mean, running_var,
               eps=1e-5, prelu_alpha=None):
    # Mirrors the kernel math (bf16 operands, f32 accumulation), f32 output.
    N, C_in, H, W = x_nchw.shape
    C_out = weight.shape[0]
    scale = gamma / jnp.sqrt(running_var + eps)
    w2 = (weight.reshape(C_out, C_in) * scale[:, None]).astype(jnp.bfloat16)
    shift = (beta - running_mean * scale).reshape(1, C_out, 1, 1)
    y = jnp.einsum("oc,nchw->nohw", w2, x_nchw.astype(jnp.bfloat16),
                   preferred_element_type=jnp.float32) + shift
    if prelu_alpha is not None:
        y = jnp.where(y > 0, y, prelu_alpha.reshape(1, C_out, 1, 1) * y)
    return y


def _check(out, ref, atol=2e-2, rtol=2e-2):
    return bool(jnp.allclose(out.astype(jnp.float32), ref.astype(jnp.float32),
                             atol=atol, rtol=rtol))


# --------------------------------- demo ----------------------------------- #

if __name__ == "__main__":
    key = jax.random.PRNGKey(0)
    ks = jax.random.split(key, 14)

    # ---- Test 1: standard path (HW >= 128): N=2, C_in=4, 16x16 -> C_out=8 ----
    N, C_in, H, W, C_out = 2, 4, 16, 16, 8
    x = jax.random.normal(ks[0], (N, C_in, H, W), dtype=jnp.float32)
    weight = jax.random.normal(ks[1], (C_out, C_in, 1, 1), jnp.float32) * 0.1
    gamma = jax.random.normal(ks[2], (C_out,), jnp.float32) * 0.1 + 1.0
    beta = jax.random.normal(ks[3], (C_out,), jnp.float32) * 0.1
    rmean = jax.random.normal(ks[4], (C_out,), jnp.float32) * 0.1
    rvar = jax.random.uniform(ks[5], (C_out,), jnp.float32,
                              minval=0.5, maxval=1.5)
    alpha = jax.random.uniform(ks[6], (C_out,), jnp.float32,
                               minval=0.1, maxval=0.4)

    out_lin = jax.block_until_ready(
        linear_block(x, weight, gamma, beta, rmean, rvar))
    ref_lin = _reference(x, weight, gamma, beta, rmean, rvar)
    assert out_lin.shape == (N, C_out, H, W)
    assert out_lin.dtype == jnp.bfloat16
    assert _check(out_lin, ref_lin), "Linear_block mismatch vs reference"

    out_conv = jax.block_until_ready(
        conv_block(x, weight, gamma, beta, rmean, rvar, alpha))
    ref_conv = _reference(x, weight, gamma, beta, rmean, rvar,
                          prelu_alpha=alpha)
    assert out_conv.shape == (N, C_out, H, W)
    assert _check(out_conv, ref_conv), "Conv_block mismatch vs reference"

    # ---- Test 2: channel-last path (HW < 128): N=1, C_in=8, 7x7 -> C_out=16 ----
    N2, C_in2, H2, W2, C_out2 = 1, 8, 7, 7, 16
    x2 = jax.random.normal(ks[7], (N2, C_in2, H2, W2), jnp.float32)
    w2 = jax.random.normal(ks[8], (C_out2, C_in2, 1, 1), jnp.float32) * 0.1
    g2 = jax.random.normal(ks[9], (C_out2,), jnp.float32) * 0.1 + 1.0
    b2 = jax.random.normal(ks[10], (C_out2,), jnp.float32) * 0.1
    m2 = jax.random.normal(ks[11], (C_out2,), jnp.float32) * 0.1
    v2 = jax.random.uniform(ks[12], (C_out2,), jnp.float32,
                            minval=0.5, maxval=1.5)
    a2 = jax.random.uniform(ks[13], (C_out2,), jnp.float32,
                            minval=0.1, maxval=0.4)

    out_cl = jax.block_until_ready(conv_block(x2, w2, g2, b2, m2, v2, a2))
    ref_cl = _reference(x2, w2, g2, b2, m2, v2, prelu_alpha=a2)
    assert out_cl.shape == (N2, C_out2, H2, W2)
    assert _check(out_cl, ref_cl), "Conv_block (HW<128) mismatch vs reference"

    print("KERNEL_OK")
</pallas_src>

<mosaic_0001>
module attributes {stable_mosaic.version = 11 : i64} {
  func.func @_pw_kernel(%arg0: i32, %arg1: i32, %arg2: memref<1x4x256xf32, #tpu.memory_space<vmem>>, %arg3: memref<8x4xbf16, #tpu.memory_space<vmem>>, %arg4: memref<8x1xf32, #tpu.memory_space<vmem>>, %arg5: memref<1x8x256xbf16, #tpu.memory_space<vmem>>) attributes {dimension_semantics = [#tpu.dimension_semantics<parallel>, #tpu.dimension_semantics<parallel>], iteration_bounds = array<i64: 2, 1>, scalar_prefetch = 0 : i64, scratch_operands = 0 : i64, tpu.core_type = #tpu.core_type<tc>, window_params = [{transform_indices = @transform_0, window_bounds = array<i64: 1, 4, 256>}, {pipeline_mode = #tpu.pipeline_mode<synchronous>, transform_indices = @transform_1, window_bounds = array<i64: 8, 4>}, {pipeline_mode = #tpu.pipeline_mode<synchronous>, transform_indices = @transform_2, window_bounds = array<i64: 8, 1>}, {transform_indices = @transform_3, window_bounds = array<i64: 1, 8, 256>}]} {
    %c0 = arith.constant 0 : index
    %c0_0 = arith.constant 0 : index
    %c0_1 = arith.constant 0 : index
    %0 = vector.load %arg2[%c0, %c0_0, %c0_1] : memref<1x4x256xf32, #tpu.memory_space<vmem>>, vector<1x4x256xf32>
    %1 = vector.shape_cast %0 : vector<1x4x256xf32> to vector<4x256xf32>
    %2 = arith.truncf %1 : vector<4x256xf32> to vector<4x256xbf16>
    %c0_2 = arith.constant 0 : index
    %c0_3 = arith.constant 0 : index
    %3 = vector.load %arg3[%c0_2, %c0_3] : memref<8x4xbf16, #tpu.memory_space<vmem>>, vector<8x4xbf16>
    %cst = arith.constant dense<0.000000e+00> : vector<8x256xf32>
    %4 = tpu.matmul %3, %2, %cst {dimension_numbers = #tpu.dot_dimension_numbers<[1], [0], [0], [1], [0, 0, 1, 1], [], []>} : vector<8x4xbf16>, vector<4x256xbf16>, vector<8x256xf32> -> vector<8x256xf32>
    %c0_4 = arith.constant 0 : index
    %c0_5 = arith.constant 0 : index
    %5 = vector.load %arg4[%c0_4, %c0_5] : memref<8x1xf32, #tpu.memory_space<vmem>>, vector<8x1xf32>
    %6 = vector.broadcast %5 : vector<8x1xf32> to vector<8x256xf32>
    %7 = arith.addf %4, %6 : vector<8x256xf32>
    %8 = arith.truncf %7 : vector<8x256xf32> to vector<8x256xbf16>
    %c0_6 = arith.constant 0 : index
    %c0_7 = arith.constant 0 : index
    %c0_8 = arith.constant 0 : index
    %9 = vector.load %arg5[%c0_6, %c0_7, %c0_8] : memref<1x8x256xbf16, #tpu.memory_space<vmem>>, vector<1x8x256xbf16>
    %10 = vector.shape_cast %9 : vector<1x8x256xbf16> to vector<8x256xbf16>
    %11 = vector.shape_cast %8 : vector<8x256xbf16> to vector<1x8x256xbf16>
    tpu.vector_store %arg5[%c0_6, %c0_7, %c0_8], %11 {strides = array<i32>} : memref<1x8x256xbf16, #tpu.memory_space<vmem>>, vector<1x8x256xbf16>,
    return
  }
  func.func @transform_0(%arg0: i32, %arg1: i32) -> (i32, i32, i32) {
    %c0_i32 = arith.constant 0 : i32
    %c0_i32_0 = arith.constant 0 : i32
    return %arg0, %c0_i32, %arg1 : i32, i32, i32
  }
  func.func @transform_1(%arg0: i32, %arg1: i32) -> (i32, i32) {
    %c0_i32 = arith.constant 0 : i32
    %c0_i32_0 = arith.constant 0 : i32
    %c0_i32_1 = arith.constant 0 : i32
    return %c0_i32, %c0_i32_0 : i32, i32
  }
  func.func @transform_2(%arg0: i32, %arg1: i32) -> (i32, i32) {
    %c0_i32 = arith.constant 0 : i32
    %c0_i32_0 = arith.constant 0 : i32
    %c0_i32_1 = arith.constant 0 : i32
    return %c0_i32, %c0_i32_0 : i32, i32
  }
  func.func @transform_3(%arg0: i32, %arg1: i32) -> (i32, i32, i32) {
    %c0_i32 = arith.constant 0 : i32
    %c0_i32_0 = arith.constant 0 : i32
    return %arg0, %c0_i32, %arg1 : i32, i32, i32
  }
}

</mosaic_0001>

<bundles_post_ra>
// kernel: tpu_custom_call.1
= control target key start
LH: loop header
LB: loop body
LE: loop exit
PB: predicated region body
PF: predicated region fallthrough
CT: control target
= control target key end

     0   :  { %8 = vsyncpa [#allocation3], 0  ;;  %s784_s0 = inlined_call_operand.hbm [shape: f32[2,4,256], index: 0, kind: input, shape index: {}]   ;;  %s785_s1 = inlined_call_operand.vmem [shape: bf16[8,4], index: 1, kind: input, shape index: {}]   ;;  %s786_s2 = inlined_call_operand.vmem [shape: f32[8,1], index: 2, kind: input, shape index: {}]   ;;  %s787_s3 = inlined_call_operand.hbm [shape: bf16[2,8,256], index: 3, kind: output, shape index: {}]  }
   0x1   :  { %10 = vsyncpa [#allocation3 + $0x1], 0 }
   0x2   :  { %11 = vsyncpa [#allocation4], 0 }
   0x3   :  { %13 = vsyncpa [#allocation4 + $0x1], 0  ;;  %s606_s12 = smov 0   ;;  %s608_s13 = smov 0  }
   0x4   :  { %s610_s14 = smov 0   ;;  %s612_s15 = smov 0  }
   0x5   :  { %s614_s16 = smov 0   ;;  %s616_s17 = smov 0  }
   0x6 LB: > { %s383_s18 = sadd.s32 4294967295, %s581_s17   ;;  %s384_s19 = sadd.s32 4294967294, %s581_s17   ;;  %s581_s17 = sphi %s616_s17, %s19_s17   ;;  %s577_s16 = sphi %s614_s16, %s803_s16   ;;  %s573_s15 = sphi %s612_s15, %s802_s15   ;;  %s569_s14 = sphi %s610_s14, %s801_s14   ;;  %s565_s13 = sphi %s608_s13, %s800_s13   ;;  %s561_s12 = sphi %s606_s12, %s799_s12  }
   0x7   : > { %s31_s20 = sadd.s32 1, %s577_s16  ;;  %s40_s21 = sadd.s32 1, %s569_s14 }
   0x8   : > { %p33_p0 = scmp.ge.s32.totalorder %s31_s20, 2  ;;  %p47_p1 = scmp.ne.s32.totalorder %s569_s14, %s565_s13 }
   0x9   : > { %p48_p2 = scmp.eq.s32.totalorder %s581_s17, 0  ;;  %p53_p3 = scmp.ne.s32.totalorder %s565_s13, %s561_s12 }
   0xa   : > { %s805_s20 = smov (%p33_p0, %s31_s20), 0  ;;  %p54_p5 = scmp.eq.s32.totalorder %s383_s18, 0 }
   0xb   : > { %p647_p4 = por %p48_p2, %p47_p1  ;;  %s35_s23 = ssub.s32 %s577_s16, %s805_s20 }
   0xc   : > { %p121_p6 = scmp.eq.s32.totalorder %s383_s18, 1  ;;  %p38_p7 = scmp.eq.s32.totalorder %s35_s23, 0 }
   0xd   : > { %p653_p8 = por %p54_p5, %p53_p3  ;;  %p127_p10 = scmp.eq.s32.totalorder %s384_s19, 1 }
   0xe   : > { %p657_p9 = por %p121_p6, %p47_p1  ;;  %p416_p13 = scmp.lt.s32.totalorder %s581_s17, 2 }
   0xf   : > { %s662_s26 = scalar_select %p38_p7, %s569_s14, %s40_s21  }
  0x10   : > { %s791_s25 = scalar_select %p657_p9, 1, 0 }
  0x11   : > { %p664_p11 = por %p127_p10, %p53_p3  ;;  %s153_s28 = sand.u32 1, %s569_s14  }
  0x12   : > { %s387_s29 = sshll.u32 %s153_s28, 3  ;;  %s401_s30 = sshll.u32 %s577_s16, 7 }
  0x13   : > { %s792_s27 = scalar_select %p664_p11, 1, 0 }
  0x14   : > { %s675_s6 = scalar_lea.hbm %s784_s0, %s401_s30  ;;  %s157_s7 = scalar_lea.vmem [#allocation2], %s387_s29 }
  0x15   : > { %s167_s8 = sshll.u32 %s157_s7, 4  ;;  %p681_p0 = pnand %p416_p13, %p647_p4  ;;  %s677_s8 = int_to_ptr.vmem [resolvable:$true] %s167_s8 }
  0x16   : > { %s154_s10 = scalar_lea.sflag [#allocation3], %s153_s28  ;;  %s469_s11 = scalar_lea.hbm %s675_s6, 128 }
  0x17   : > { %p470_p3 = scmp.ne.s32.totalorder %s675_s6, %s469_s11  ;;  %p471_p5 = pneg %p681_p0 }
  0x18   : > { %s474_s21 = scalar_lea.hbm %s784_s0, 256  ;;  %p475_p4 = scmp.lt.u32.totalorder %s675_s6, %s784_s0 }
  0x19   : > { %p472_p6 = pnand %p471_p5, %p470_p3  ;;  %p476_p10 = scmp.lt.u32.totalorder %s474_s21, %s469_s11 }
  0x1a   : > { %p478_p12 = scmp.lt.u32.totalorder %s469_s11, %s675_s6 }
  0x1b   : > { %p473_p7 = pneg %p472_p6  ;;  %p477_p13 = por %p476_p10, %p475_p4 }
  0x1d   : > { %p479_p1 = por %p478_p12, %p477_p13 }
  0x1f   : > { %p480_p2 = pnand %p479_p1, %p473_p7 }
  0x21   : > { %483 = shalt.err (!%p480_p2)
}
  0x22   : > { %s484_s28 = scalar_lea.vmem %s677_s8, 128  ;;  %s583_s29 = smov [#allocation2]  }
  0x23   : > { %p485_p3 = scmp.ne.s32.totalorder %s677_s8, %s484_s28  ;;  %s489_s30 = sshll.u32 %s583_s29, 4  ;;  %s490_s30 = int_to_ptr.vmem [resolvable:$false] %s489_s30 }
  0x24   : > { %s491_s4 = scalar_lea.vmem %s490_s30, 256  ;;  %p492_p9 = scmp.lt.s32.totalorder %s677_s8, %s490_s30 }
  0x25   : > { %p487_p6 = pnand %p485_p3, %p471_p5  ;;  %p493_p4 = scmp.lt.s32.totalorder %s491_s4, %s484_s28 }
  0x27   : > { %p488_p11 = pneg %p487_p6  ;;  %p494_p10 = por %p493_p4, %p492_p9 }
  0x29   : > { %p495_p12 = pnand %p494_p10, %p488_p11 }
  0x2b   : > { %498 = shalt.err (!%p495_p12)
}
  0x2c   : > { %411 = dma.hbm_to_vmem [thread:$0]  (!%p681_p0), %s675_s6, 128, %s677_s8, %s154_s10  }
  0x2d   : > { %p794_p1 = scmp.lt.s32.totalorder %s581_s17, 3  ;;  %p795_p2 = scmp.ge.s32.totalorder %s581_s17, 1 }
  0x2f   : > { %p173_p5 = pnand %p795_p2, %p794_p1 }
  0x30   : > { %s717_s5 = sand.u32 (!%p173_p5), 1, %s565_s13  }
  0x31   : > { %176 = sbr.rel (%p173_p5) target bundleno = 297 (0x129), region = 32  ;;  %s391_s7 = sshll.u32 (!%p173_p5), %s717_s5, 3 }
  0x32   : > { %s179_s11 = scalar_lea.sflag (!%p173_p5), [#allocation3], %s717_s5  ;;  %s182_s18 = scalar_lea.vmem (!%p173_p5), [#allocation2], %s391_s7 }
  0x38   : > { %552 = dma.done.wait (%p653_p8), %s179_s11, 128  }
  0x39   : > { %554 = vsyncadd (%p653_p8), %s179_s11, 4294967168  ;;  %v584_v0 = vmov 0   ;;  %v208_v1 = vld [vmem:[%s182_s18] sm:$0xff]  ;;  %vm225_vm0 = vcmask 1041408   ;;  %vm221_vm1 = vcmask 31744   ;;  %s403_s10 = sshll.u32 %s573_s15, 7 }
  0x3a   : > { %264 = vmatprep.mubr.bf16.mxu0 %v584_v0  ;;  %467 = vset.pattern.permute.xlu0 %v584_v0  ;;  %v215_v2 = vld [vmem:[%s786_s2] sm:$0xff]  ;;  %v210_v3 = vcombine.high %v208_v1, %v208_v1  ;;  %v212_v4 = vpack.c.bf16 %v208_v1, %v208_v1  ;;  %s204_s19 = scalar_lea.vmem [#allocation5], %s391_s7  ;;  %s735_s28 = scalar_lea.hbm %s787_s3, %s403_s10 }
  0x3b   : > { %218 = vperm.xlu0 %467, %v215_v2   ;;  %v214_v7 = vld [vmem:[%s785_s1] sm:$0xf]  ;;  %s299_s21 = sshll.u32 %s204_s19, 4  ;;  %s283_s29 = scalar_lea.sflag [#allocation4], %s717_s5  ;;  %s737_s21 = int_to_ptr.vmem [resolvable:$true] %s299_s21 }
  0x3c   : > { %v213_v5 = vpack.c.bf16 %v210_v3, %v210_v3  ;;  %v227_v6 = vsel %vm225_vm0, %v212_v4, 0  ;;  %s499_s30 = scalar_lea.vmem %s737_s21, 128  ;;  %p796_p9 = scmp.ne.s32.totalorder %s791_s25, 0 }
  0x3d   : > { %p500_p8 = scmp.ne.s32.totalorder %s737_s21, %s499_s30  ;;  %s585_s15 = smov [#allocation5]  }
  0x3e   : > { %393 = vmatprep.subr.msk.bf16.mxu0 %vm225_vm0, %v213_v5  ;;  %s503_s4 = sshll.u32 %s585_s15, 4  ;;  %s504_s4 = int_to_ptr.vmem [resolvable:$false] %s503_s4 }
  0x3f   : > { %233 = vmatpush1.bf16.msra.mxu0 %v227_v6  ;;  %p501_p11 = pnand %p500_p8, %p796_p9  ;;  %s505_s7 = scalar_lea.vmem %s504_s4, 256 }
  0x40   : > { %p506_p7 = scmp.lt.s32.totalorder %s737_s21, %s504_s4  ;;  %p507_p13 = scmp.lt.s32.totalorder %s505_s7, %s499_s30 }
  0x41   : > { %p502_p0 = pneg %p501_p11 }
  0x42   : > { %394 = vmatmul.mubr.msk.bf16.vlgmr.msra.gmra.mrb[0].mxu0 %vm221_vm1, %v214_v7  ;;  %p508_p3 = por %p507_p13, %p506_p7 }
  0x44   : > { %p509_p6 = pnand %p508_p3, %p502_p0 }
  0xba   : > { %v219_v8 = vpop.permute.xlu0 %218 }
 0x115   : > { %v266_v9 = vpop.f32.mrb[0].mxu0 }
 0x116   : > { %v267_v10 = vadd.f32 %v266_v9, %v219_v8  ;;  %v268_v11 = vpop.f32.mrb[1].mxu0 }
 0x117   : > { %v269_v12 = vadd.f32 %v268_v11, %v219_v8  ;;  %v270_v13 = vpop.f32.mrb[2].mxu0 }
 0x118   : > { %v271_v14 = vpop.f32.mrb[3].mxu0 }
 0x119   : > { %v402_v15 = vpack.c.bf16 %v269_v12, %v267_v10 }
 0x11b   : > { %281 = vst [vmem:[%s204_s19] sm:$0xff] %v402_v15 }
 0x11c   : > { %512 = shalt.err (!%p509_p6)
}
 0x11d   : > { %s513_s5 = scalar_lea.hbm %s735_s28, 128  ;;  %s517_s6 = scalar_lea.hbm %s787_s3, 256 }
 0x11e   : > { %p514_p4 = scmp.ne.s32.totalorder %s735_s28, %s513_s5  ;;  %p518_p1 = scmp.lt.u32.totalorder %s735_s28, %s787_s3 }
 0x11f   : > { %p519_p2 = scmp.lt.u32.totalorder %s517_s6, %s513_s5  ;;  %p521_p8 = scmp.lt.u32.totalorder %s513_s5, %s735_s28 }
 0x120   : > { %p515_p10 = pnand %p514_p4, %p796_p9 }
 0x121   : > { %p520_p5 = por %p519_p2, %p518_p1 }
 0x122   : > { %p516_p12 = pneg %p515_p10 }
 0x123   : > { %p522_p11 = por %p521_p8, %p520_p5 }
 0x125   : > { %p523_p0 = pnand %p522_p11, %p516_p12 }
 0x127   : > { %526 = shalt.err (!%p523_p0)
}
 0x128   : > { %406 = dma.vmem_to_hbm [thread:$0]  (%p796_p9), %s737_s21, 128, %s735_s28, %s283_s29  }
 0x129 PF: > { %s311_s24 = sand.u32 1, %s561_s12   ;;  %p797_p7 = scmp.ne.s32.totalorder %s792_s27, 0 }
 0x12a   : > { %p798_p13 = scmp.ge.s32.totalorder %s581_s17, 2  ;;  %s312_s10 = scalar_lea.sflag [#allocation4], %s311_s24 }
 0x12c   : > { %p413_p3 = pnand %p798_p13, %p797_p7 }
 0x12e   : > { %556 = dma.done.wait (!%p413_p3), %s312_s10, 128  }
 0x12f   : > { %558 = vsyncadd (!%p413_p3), %s312_s10, 4294967168  ;;  %s19_s17 = sadd.s32 1, %s581_s17   ;;  %s799_s12 = smov %s565_s13 }
 0x130   : > { %p16_p6 = scmp.ge.s32.totalorder %s19_s17, 4   ;;  %s800_s13 = smov %s569_s14 }
 0x131   : > { %s801_s14 = smov %s662_s26  ;;  %s802_s15 = smov %s577_s16 }
 0x132   : > { %s803_s16 = smov %s805_s20  ;;  %18 = sbr.rel (!%p16_p6) target bundleno = 6 (0x6), region = 77 }
 0x139   :  { %317 = vsyncpa [#allocation3], 1 }
 0x13a   :  { %319 = vsyncpa [#allocation3 + $0x1], 1 }
 0x13b   :  { %320 = vsyncpa [#allocation4], 1 }
 0x13c   :  { %322 = vsyncpa [#allocation4 + $0x1], 1 }

</bundles_post_ra>
